<compile_context>
chip_gen: v7x
topology: tpu7x:2x2x1
jax: 0.10.0
libtpu: 0.0.40
codegen_flags: <defaults>
</compile_context>

<pallas_src>
import functools

import jax
import jax.numpy as jnp
from jax.experimental import pallas as pl
from jax.experimental.pallas import tpu as pltpu

LANE = 128          # lane width: output classes padded to this for dense stores
SUBLANE_BF16 = 16   # bf16 sublane packing: batch tiles rounded to multiples of 16
MAX_TILE_B = 512    # batch-tile cap (mem-bound kernel: bigger tiles amortize step overhead)


def _round_up(x, m):
    return (x + m - 1) // m * m


def _cdiv(a, b):
    return (a + b - 1) // b


def emotionnet_kernel(x_ref, w1_ref, b1_ref, w2_ref, b2_ref, w3_ref, b3_ref, o_ref):
    """Fused MLP forward: relu(x@W1+b1) -> relu(.@W2+b2) -> .@W3+b3.

    Matmuls run as bf16 operands on the MXU with f32 accumulation; bias adds and
    ReLU are in f32. Dropout is identity (eval-mode semantics).
    """
    # In-kernel cast: kernel is DMA-bound, the VPU cast is free and saves the
    # wrapper-side f32->bf16 pass over x in HBM.
    x = x_ref[...].astype(jnp.bfloat16)                          # (tile_b, d_in)

    h1 = jnp.dot(x, w1_ref[...], preferred_element_type=jnp.float32) + b1_ref[...]
    h1 = jnp.maximum(h1, 0.0).astype(jnp.bfloat16)               # ReLU; Dropout -> identity

    h2 = jnp.dot(h1, w2_ref[...], preferred_element_type=jnp.float32) + b2_ref[...]
    h2 = jnp.maximum(h2, 0.0).astype(jnp.bfloat16)               # ReLU; Dropout -> identity

    out = jnp.dot(h2, w3_ref[...], preferred_element_type=jnp.float32) + b3_ref[...]
    o_ref[...] = out.astype(o_ref.dtype)                         # bf16, lane-dense (tile_b, 128)


def prepare_params(w1, b1, w2, b2, w3, b3):
    """One-time packing: bf16 weights, f32 biases, W3/b3 zero-padded to a
    lane-dense (multiple-of-128) class dimension.  Hoisted out of the forward
    call so per-call overhead is just the fused kernel."""
    num_classes = w3.shape[1]
    n_out = _round_up(max(num_classes, LANE), LANE)
    packed = (
        w1.astype(jnp.bfloat16),
        b1.reshape(1, -1).astype(jnp.float32),
        w2.astype(jnp.bfloat16),
        b2.reshape(1, -1).astype(jnp.float32),
        jnp.pad(w3.astype(jnp.bfloat16), ((0, 0), (0, n_out - num_classes))),
        jnp.pad(b3.reshape(1, -1).astype(jnp.float32), ((0, 0), (0, n_out - num_classes))),
    )
    return jax.tree_util.tree_map(jax.device_put, packed), num_classes


@functools.partial(jax.jit, static_argnames=("num_classes", "tile_b"))
def emotionnet_forward(x, w1b, b1f, w2b, b2f, w3b, b3f, *, num_classes, tile_b=None):
    B, d_in = x.shape
    n_out = w3b.shape[1]

    # --- batch tiling: large MXU-friendly tiles (cap 512); for big batches pick
    # tile_b ~ B/2 so the grid has >= 2 steps (keeps both TCs busy on v7x and
    # gives the pipeline something to overlap). Ragged batches are zero-padded.
    if tile_b is None:
        tile_b = min(MAX_TILE_B, _round_up(max(_cdiv(B, 2), 1), SUBLANE_BF16))
        tile_b = max(tile_b, SUBLANE_BF16)
    B_pad = _round_up(B, tile_b)

    x_f32 = x.astype(jnp.float32)
    if B_pad != B:
        x_f32 = jnp.pad(x_f32, ((0, B_pad - B), (0, 0)))

    grid = (B_pad // tile_b,)

    # Grid-invariant weights/biases: whole array resident in VMEM (no block
    # pipelining / double-buffering for data that never changes across steps).
    vmem_spec = pl.BlockSpec(memory_space=pltpu.MemorySpace.VMEM)

    out = pl.pallas_call(
        emotionnet_kernel,
        # bf16 output halves HBM writeback bytes; padded to 128 lanes for
        # unmasked, lane-dense stores, sliced back below.
        out_shape=jax.ShapeDtypeStruct((B_pad, n_out), jnp.bfloat16),
        grid_spec=pltpu.PrefetchScalarGridSpec(
            num_scalar_prefetch=0,
            grid=grid,
            in_specs=[
                pl.BlockSpec((tile_b, d_in), lambda i: (i, 0)),  # x tile (pipelined)
                vmem_spec, vmem_spec,                            # W1, b1
                vmem_spec, vmem_spec,                            # W2, b2
                vmem_spec, vmem_spec,                            # W3, b3
            ],
            out_specs=pl.BlockSpec((tile_b, n_out), lambda i: (i, 0)),
        ),
        compiler_params=pltpu.CompilerParams(
            dimension_semantics=("parallel",),          # batch axis is independent
            vmem_limit_bytes=32 * 1024 * 1024,          # explicit; safe on v7x scoped VMEM
        ),
    )(x_f32, w1b, b1f, w2b, b2f, w3b, b3f)

    return out[:B, :num_classes].astype(x.dtype)


def init_params(key, input_size, hidden_size=256, num_classes=6):
    """Parameters matching the nn.Linear shapes, stored as (in, out)."""
    ks = jax.random.split(key, 6)
    half = hidden_size // 2

    def uniform_init(k, fan_in, shape):
        bound = 1.0 / jnp.sqrt(fan_in)  # PyTorch default U(-1/sqrt(fan_in), 1/sqrt(fan_in))
        return jax.random.uniform(k, shape, jnp.float32, -bound, bound)

    w1 = uniform_init(ks[0], input_size, (input_size, hidden_size))
    b1 = uniform_init(ks[1], input_size, (1, hidden_size))
    w2 = uniform_init(ks[2], hidden_size, (hidden_size, half))
    b2 = uniform_init(ks[3], hidden_size, (1, half))
    w3 = uniform_init(ks[4], half, (half, num_classes))
    b3 = uniform_init(ks[5], half, (1, num_classes))
    return w1, b1, w2, b2, w3, b3


def reference_forward_bf16(x, w1, b1, w2, b2, w3, b3):
    """Pure-JAX reference matching the kernel precision (bf16 operands, f32 accum,
    bf16 final store)."""
    bf = jnp.bfloat16
    h1 = jnp.maximum(
        jnp.dot(x.astype(bf), w1.astype(bf), preferred_element_type=jnp.float32) + b1, 0.0)
    h2 = jnp.maximum(
        jnp.dot(h1.astype(bf), w2.astype(bf), preferred_element_type=jnp.float32) + b2, 0.0)
    out = jnp.dot(h2.astype(bf), w3.astype(bf), preferred_element_type=jnp.float32) + b3
    return out.astype(bf).astype(jnp.float32)   # kernel stores logits as bf16


def reference_forward_f32(x, w1, b1, w2, b2, w3, b3):
    h1 = jnp.maximum(x @ w1 + b1, 0.0)
    h2 = jnp.maximum(h1 @ w2 + b2, 0.0)
    return h2 @ w3 + b3


if __name__ == "__main__":
    key = jax.random.PRNGKey(0)
    k_x, k_p = jax.random.split(key)

    batch = 8
    input_size = 64
    hidden_size = 256
    num_classes = 6

    x = jax.random.normal(k_x, (batch, input_size), dtype=jnp.float32)
    params = init_params(k_p, input_size, hidden_size, num_classes)

    packed, n_cls = prepare_params(*params)           # one-time pack (bf16 / padded)
    out = jax.block_until_ready(
        emotionnet_forward(x, *packed, num_classes=n_cls))
    assert out.shape == (batch, num_classes), out.shape

    ref_bf16 = reference_forward_bf16(x, *params)
    assert jnp.allclose(out, ref_bf16, atol=1e-2, rtol=1e-2), "mismatch vs bf16 reference"

    ref_f32 = reference_forward_f32(x, *params)
    assert jnp.allclose(out, ref_f32, atol=5e-2, rtol=5e-2), "mismatch vs f32 reference"

    print("KERNEL_OK")
</pallas_src>

<mosaic_0001>
module attributes {stable_mosaic.version = 11 : i64} {
  func.func @emotionnet_kernel(%arg0: i32, %arg1: memref<16x64xf32, #tpu.memory_space<vmem>>, %arg2: memref<64x256xbf16, #tpu.memory_space<vmem>>, %arg3: memref<1x256xf32, #tpu.memory_space<vmem>>, %arg4: memref<256x128xbf16, #tpu.memory_space<vmem>>, %arg5: memref<1x128xf32, #tpu.memory_space<vmem>>, %arg6: memref<128x128xbf16, #tpu.memory_space<vmem>>, %arg7: memref<1x128xf32, #tpu.memory_space<vmem>>, %arg8: memref<16x128xbf16, #tpu.memory_space<vmem>>) attributes {dimension_semantics = [#tpu.dimension_semantics<parallel>], iteration_bounds = array<i64: 1>, scalar_prefetch = 0 : i64, scratch_operands = 0 : i64, tpu.core_type = #tpu.core_type<tc>, window_params = [{transform_indices = @transform_0, window_bounds = array<i64: 16, 64>}, {pipeline_mode = #tpu.pipeline_mode<synchronous>, transform_indices = @transform_1, window_bounds = array<i64: 64, 256>}, {pipeline_mode = #tpu.pipeline_mode<synchronous>, transform_indices = @transform_2, window_bounds = array<i64: 1, 256>}, {pipeline_mode = #tpu.pipeline_mode<synchronous>, transform_indices = @transform_3, window_bounds = array<i64: 256, 128>}, {pipeline_mode = #tpu.pipeline_mode<synchronous>, transform_indices = @transform_4, window_bounds = array<i64: 1, 128>}, {pipeline_mode = #tpu.pipeline_mode<synchronous>, transform_indices = @transform_5, window_bounds = array<i64: 128, 128>}, {pipeline_mode = #tpu.pipeline_mode<synchronous>, transform_indices = @transform_6, window_bounds = array<i64: 1, 128>}, {transform_indices = @transform_7, window_bounds = array<i64: 16, 128>}]} {
    %c0 = arith.constant 0 : index
    %c0_0 = arith.constant 0 : index
    %0 = vector.load %arg1[%c0, %c0_0] : memref<16x64xf32, #tpu.memory_space<vmem>>, vector<16x64xf32>
    %1 = arith.truncf %0 : vector<16x64xf32> to vector<16x64xbf16>
    %c0_1 = arith.constant 0 : index
    %c0_2 = arith.constant 0 : index
    %2 = vector.load %arg2[%c0_1, %c0_2] : memref<64x256xbf16, #tpu.memory_space<vmem>>, vector<64x256xbf16>
    %cst = arith.constant dense<0.000000e+00> : vector<16x256xf32>
    %3 = tpu.matmul %1, %2, %cst {dimension_numbers = #tpu.dot_dimension_numbers<[1], [0], [0], [1], [0, 0, 1, 1], [], []>} : vector<16x64xbf16>, vector<64x256xbf16>, vector<16x256xf32> -> vector<16x256xf32>
    %c0_3 = arith.constant 0 : index
    %c0_4 = arith.constant 0 : index
    %4 = vector.load %arg3[%c0_3, %c0_4] : memref<1x256xf32, #tpu.memory_space<vmem>>, vector<1x256xf32>
    %5 = vector.broadcast %4 : vector<1x256xf32> to vector<16x256xf32>
    %6 = arith.addf %3, %5 : vector<16x256xf32>
    %cst_5 = arith.constant 0.000000e+00 : f32
    %7 = vector.broadcast %cst_5 : f32 to vector<16x256xf32>
    %8 = arith.maximumf %6, %7 : vector<16x256xf32>
    %9 = arith.truncf %8 : vector<16x256xf32> to vector<16x256xbf16>
    %c0_6 = arith.constant 0 : index
    %c0_7 = arith.constant 0 : index
    %10 = vector.load %arg4[%c0_6, %c0_7] : memref<256x128xbf16, #tpu.memory_space<vmem>>, vector<256x128xbf16>
    %cst_8 = arith.constant dense<0.000000e+00> : vector<16x128xf32>
    %11 = tpu.matmul %9, %10, %cst_8 {dimension_numbers = #tpu.dot_dimension_numbers<[1], [0], [0], [1], [0, 0, 1, 1], [], []>} : vector<16x256xbf16>, vector<256x128xbf16>, vector<16x128xf32> -> vector<16x128xf32>
    %c0_9 = arith.constant 0 : index
    %c0_10 = arith.constant 0 : index
    %12 = vector.load %arg5[%c0_9, %c0_10] : memref<1x128xf32, #tpu.memory_space<vmem>>, vector<1x128xf32>
    %13 = vector.broadcast %12 : vector<1x128xf32> to vector<16x128xf32>
    %14 = arith.addf %11, %13 : vector<16x128xf32>
    %cst_11 = arith.constant 0.000000e+00 : f32
    %15 = vector.broadcast %cst_11 : f32 to vector<16x128xf32>
    %16 = arith.maximumf %14, %15 : vector<16x128xf32>
    %17 = arith.truncf %16 : vector<16x128xf32> to vector<16x128xbf16>
    %c0_12 = arith.constant 0 : index
    %c0_13 = arith.constant 0 : index
    %18 = vector.load %arg6[%c0_12, %c0_13] : memref<128x128xbf16, #tpu.memory_space<vmem>>, vector<128x128xbf16>
    %cst_14 = arith.constant dense<0.000000e+00> : vector<16x128xf32>
    %19 = tpu.matmul %17, %18, %cst_14 {dimension_numbers = #tpu.dot_dimension_numbers<[1], [0], [0], [1], [0, 0, 1, 1], [], []>} : vector<16x128xbf16>, vector<128x128xbf16>, vector<16x128xf32> -> vector<16x128xf32>
    %c0_15 = arith.constant 0 : index
    %c0_16 = arith.constant 0 : index
    %20 = vector.load %arg7[%c0_15, %c0_16] : memref<1x128xf32, #tpu.memory_space<vmem>>, vector<1x128xf32>
    %21 = vector.broadcast %20 : vector<1x128xf32> to vector<16x128xf32>
    %22 = arith.addf %19, %21 : vector<16x128xf32>
    %23 = arith.truncf %22 : vector<16x128xf32> to vector<16x128xbf16>
    %c0_17 = arith.constant 0 : index
    %c0_18 = arith.constant 0 : index
    %24 = vector.load %arg8[%c0_17, %c0_18] : memref<16x128xbf16, #tpu.memory_space<vmem>>, vector<16x128xbf16>
    tpu.vector_store %arg8[%c0_17, %c0_18], %23 {strides = array<i32>} : memref<16x128xbf16, #tpu.memory_space<vmem>>, vector<16x128xbf16>,
    return
  }
  func.func @transform_0(%arg0: i32) -> (i32, i32) {
    %c0_i32 = arith.constant 0 : i32
    %c0_i32_0 = arith.constant 0 : i32
    return %arg0, %c0_i32 : i32, i32
  }
  func.func @transform_1(%arg0: i32) -> (i32, i32) {
    %c0_i32 = arith.constant 0 : i32
    %c0_i32_0 = arith.constant 0 : i32
    %c0_i32_1 = arith.constant 0 : i32
    return %c0_i32, %c0_i32_0 : i32, i32
  }
  func.func @transform_2(%arg0: i32) -> (i32, i32) {
    %c0_i32 = arith.constant 0 : i32
    %c0_i32_0 = arith.constant 0 : i32
    %c0_i32_1 = arith.constant 0 : i32
    return %c0_i32, %c0_i32_0 : i32, i32
  }
  func.func @transform_3(%arg0: i32) -> (i32, i32) {
    %c0_i32 = arith.constant 0 : i32
    %c0_i32_0 = arith.constant 0 : i32
    %c0_i32_1 = arith.constant 0 : i32
    return %c0_i32, %c0_i32_0 : i32, i32
  }
  func.func @transform_4(%arg0: i32) -> (i32, i32) {
    %c0_i32 = arith.constant 0 : i32
    %c0_i32_0 = arith.constant 0 : i32
    %c0_i32_1 = arith.constant 0 : i32
    return %c0_i32, %c0_i32_0 : i32, i32
  }
  func.func @transform_5(%arg0: i32) -> (i32, i32) {
    %c0_i32 = arith.constant 0 : i32
    %c0_i32_0 = arith.constant 0 : i32
    %c0_i32_1 = arith.constant 0 : i32
    return %c0_i32, %c0_i32_0 : i32, i32
  }
  func.func @transform_6(%arg0: i32) -> (i32, i32) {
    %c0_i32 = arith.constant 0 : i32
    %c0_i32_0 = arith.constant 0 : i32
    %c0_i32_1 = arith.constant 0 : i32
    return %c0_i32, %c0_i32_0 : i32, i32
  }
  func.func @transform_7(%arg0: i32) -> (i32, i32) {
    %c0_i32 = arith.constant 0 : i32
    %c0_i32_0 = arith.constant 0 : i32
    return %arg0, %c0_i32 : i32, i32
  }
}

</mosaic_0001>

<bundles_post_ra>
// kernel: emotionnet_forward.1
= control target key start
LH: loop header
LB: loop body
LE: loop exit
PB: predicated region body
PF: predicated region fallthrough
CT: control target
= control target key end

     0   :  { %12 = vsyncpa [#allocation3], 0  ;;  %s812_s0 = inlined_call_operand.vmem [shape: f32[16,64], index: 0, kind: input, shape index: {}]   ;;  %s813_s1 = inlined_call_operand.hbm [shape: bf16[64,256], index: 1, kind: input, shape index: {}]   ;;  %s814_s2 = inlined_call_operand.vmem [shape: f32[1,256], index: 2, kind: input, shape index: {}]   ;;  %s815_s3 = inlined_call_operand.hbm [shape: bf16[256,128], index: 3, kind: input, shape index: {}]   ;;  %s816_s4 = inlined_call_operand.vmem [shape: f32[1,128], index: 4, kind: input, shape index: {}]   ;;  %s817_s5 = inlined_call_operand.hbm [shape: bf16[128,128], index: 5, kind: input, shape index: {}]   ;;  %s818_s6 = inlined_call_operand.vmem [shape: f32[1,128], index: 6, kind: input, shape index: {}]   ;;  %s819_s7 = inlined_call_operand.vmem [shape: bf16[16,128], index: 7, kind: output, shape index: {}]  }
   0x1   :  { %13 = vsyncpa [#allocation5], 0  ;;  %s702_s24 = smov [#allocation4]   ;;  %s632_s28 = scalar_lea.hbm %s815_s3, 2048 }
   0x2   :  { %s35_s25 = sshll.u32 %s702_s24, 4  ;;  %p633_p0 = scmp.ne.s32.totalorder %s815_s3, %s632_s28  ;;  %s36_s25 = int_to_ptr.vmem [resolvable:$true] %s35_s25 }
   0x3   :  { %p636_p1 = scmp.lt.u32.totalorder %s632_s28, %s815_s3 }
   0x5   :  { %p638_p2 = pnand %p636_p1, %p633_p0 }
   0x7   :  { %641 = shalt.err (!%p638_p2)
}
   0x8   :  { %s642_s10 = scalar_lea.vmem %s36_s25, 2048  ;;  %p647_p4 = scmp.lt.s32.totalorder %s36_s25, %s36_s25 }
   0x9   :  { %p643_p3 = scmp.ne.s32.totalorder %s36_s25, %s642_s10  ;;  %p648_p5 = scmp.lt.s32.totalorder %s642_s10, %s642_s10 }
   0xb   :  { %p649_p6 = por %p648_p5, %p647_p4 }
   0xd   :  { %p650_p7 = pnand %p649_p6, %p643_p3 }
   0xf   :  { %653 = shalt.err (!%p650_p7)
}
  0x10   :  { %s703_s11 = smov 64   ;;  %s704_s12 = smov 4  }
  0x11   :  { %41 = dma.hbm_to_vmem [thread:$0]  %s815_s3, 2048, %s36_s25, [#allocation5], %s703_s11, %s703_s11, %s704_s12  }
  0x12   :  { %s705_s15 = smov [#allocation2]   ;;  %s654_s19 = scalar_lea.hbm %s813_s1, 1024 }
  0x13   :  { %s21_s16 = sshll.u32 %s705_s15, 4  ;;  %p655_p8 = scmp.ne.s32.totalorder %s813_s1, %s654_s19  ;;  %s22_s16 = int_to_ptr.vmem [resolvable:$true] %s21_s16 }
  0x14   :  { %p658_p9 = scmp.lt.u32.totalorder %s654_s19, %s813_s1 }
  0x16   :  { %p660_p10 = pnand %p658_p9, %p655_p8 }
  0x18   :  { %663 = shalt.err (!%p660_p10)
}
  0x19   :  { %s664_s24 = scalar_lea.vmem %s22_s16, 1024  ;;  %p669_p12 = scmp.lt.s32.totalorder %s22_s16, %s22_s16 }
  0x1a   :  { %p665_p11 = scmp.ne.s32.totalorder %s22_s16, %s664_s24  ;;  %p670_p13 = scmp.lt.s32.totalorder %s664_s24, %s664_s24 }
  0x1c   :  { %p671_p0 = por %p670_p13, %p669_p12 }
  0x1e   :  { %p672_p1 = pnand %p671_p0, %p665_p11 }
  0x20   :  { %675 = shalt.err (!%p672_p1)
}
  0x21   :  { %s706_s3 = smov 128   ;;  %s707_s25 = smov 8  }
  0x22   :  { %27 = dma.hbm_to_vmem [thread:$0]  %s813_s1, 1024, %s22_s16, [#allocation3], %s706_s3, %s706_s3, %s707_s25  }
  0x23   :  { %s708_s28 = smov [#allocation6]   ;;  %s676_s9 = scalar_lea.hbm %s817_s5, 1024 }
  0x24   :  { %s49_s29 = sshll.u32 %s708_s28, 4  ;;  %p677_p2 = scmp.ne.s32.totalorder %s817_s5, %s676_s9  ;;  %s50_s29 = int_to_ptr.vmem [resolvable:$true] %s49_s29 }
  0x25   :  { %p680_p3 = scmp.lt.u32.totalorder %s676_s9, %s817_s5 }
  0x27   :  { %p682_p4 = pnand %p680_p3, %p677_p2 }
  0x29   :  { %685 = shalt.err (!%p682_p4)
}
  0x2a   :  { %s686_s17 = scalar_lea.vmem %s50_s29, 1024  ;;  %p691_p6 = scmp.lt.s32.totalorder %s50_s29, %s50_s29 }
  0x2b   :  { %p687_p5 = scmp.ne.s32.totalorder %s50_s29, %s686_s17  ;;  %p692_p7 = scmp.lt.s32.totalorder %s686_s17, %s686_s17 }
  0x2d   :  { %p693_p8 = por %p692_p7, %p691_p6 }
  0x2f   :  { %p694_p9 = pnand %p693_p8, %p687_p5 }
  0x31   :  { %697 = shalt.err (!%p694_p9)
}
  0x32   :  { %55 = dma.hbm_to_vmem [thread:$0]  %s817_s5, 1024, %s50_s29, [#allocation5], %s703_s11, %s703_s11, %s704_s12  }
  0x33   :  { %698 = dma.done.wait [#allocation3], 1024  }
  0x34   :  { %699 = vsyncadd [#allocation3], 4294966272 }
  0x35   :  { %700 = dma.done.wait [#allocation5], 3072  }
  0x36   :  { %701 = vsyncadd [#allocation5], 4294964224  ;;  %v709_v0 = vmov 0   ;;  %v596_v1 = vld [vmem:[#allocation2 + $0x4] ss:$8 sps:$4 sm:$0xff]   ;;  %v612_v14 = vld [vmem:[#allocation4 + $0x50] sm:$0xff]   ;;  %v81_v34 = vlaneseq }
  0x37   :  { %167 = vmatprep.mubr.bf16.mxu0 %v709_v0  ;;  %v598_v2 = vld [vmem:[#allocation2] ss:$8 sps:$4 sm:$0xff]   ;;  %135 = vmatprep.subr.bf16.mxu0 %v596_v1  ;;  %v599_v3 = vld [vmem:[#allocation2 + $0x14] ss:$8 sps:$4 sm:$0xff]   ;;  %v601_v4 = vld [vmem:[#allocation2 + $0x10] ss:$8 sps:$4 sm:$0xff]  }
  0x38   :  { %136 = vmatpush1.bf16.msra.mxu0 %v598_v2  ;;  %v602_v5 = vld [vmem:[#allocation2 + $0x24] ss:$8 sps:$4 sm:$0xff]   ;;  %v604_v6 = vld [vmem:[#allocation2 + $0x20] ss:$8 sps:$4 sm:$0xff]   ;;  %v605_v7 = vld [vmem:[#allocation2 + $0x34] ss:$8 sps:$4 sm:$0xff]  }
  0x39   :  { %137 = vmatprep.subr.bf16.mxu0 %v599_v3  ;;  %v608_v8 = vld [vmem:[#allocation4 + $0x40] sm:$0xff]   ;;  %v610_v10 = vld [vmem:[#allocation4 + $0x48] sm:$0xff]   ;;  %v607_v11 = vld [vmem:[#allocation2 + $0x30] ss:$8 sps:$4 sm:$0xff]   ;;  %vm131_vm0 = vcmask 523264   ;;  %v710_v29 = vmov 0.0  }
  0x3a   :  { %v609_v9 = vld [vmem:[#allocation4] sm:$0xff]   ;;  %535 = vmatprep.subr.bf16.mxu1 %v608_v8  ;;  %v611_v13 = vld [vmem:[#allocation4 + $0x8] sm:$0xff]   ;;  %v613_v16 = vld [vmem:[#allocation4 + $0x10] sm:$0xff]   ;;  %v82_v35 = vshrl.u32 %v81_v34, 7  ;;  %vm711_vm1 = vmmov 0  }
  0x3b   :  { %v68_v12 = vld [vmem:[%s812_s0] sm:$0xff]  ;;  %536 = vmatpush3.bf16.msra.mxu1 %v609_v9  ;;  %v69_v15 = vld [vmem:[%s812_s0 + $0x8] sm:$0xff]  ;;  %v614_v18 = vld [vmem:[#allocation4 + $0x58] sm:$0xff]  }
  0x3c   :  { %138 = vmatpush1.bf16.msra.mxu0 %v601_v4  ;;  %537 = vmatprep.subr.bf16.mxu1 %v610_v10  ;;  %v70_v17 = vpack.c.bf16 %v69_v15, %v68_v12  ;;  %v615_v19 = vld [vmem:[#allocation4 + $0x18] sm:$0xff]   ;;  %v616_v20 = vld [vmem:[#allocation4 + $0x60] sm:$0xff]   ;;  %v618_v22 = vld [vmem:[#allocation4 + $0x68] sm:$0xff]   ;;  %v83_v36 = vsub.s32 0, %v82_v35  ;;  %v87_v38 = vsub.s32 1, %v82_v35 }
  0x3d   :  { %139 = vmatprep.subr.bf16.mxu0 %v602_v5  ;;  %v617_v21 = vld [vmem:[#allocation4 + $0x20] sm:$0xff]   ;;  %v619_v23 = vld [vmem:[#allocation4 + $0x28] sm:$0xff]   ;;  %v620_v24 = vld [vmem:[#allocation4 + $0x70] sm:$0xff]  }
  0x3e   :  { %v621_v25 = vld [vmem:[#allocation4 + $0x30] sm:$0xff]   ;;  %v622_v26 = vld [vmem:[#allocation4 + $0x78] sm:$0xff]   ;;  %v624_v28 = vld [vmem:[#allocation6] sm:$0xff]  }
  0x3f   :  { %538 = vmatpush3.bf16.msra.mxu1 %v611_v13  ;;  %v623_v27 = vld [vmem:[#allocation4 + $0x38] sm:$0xff]   ;;  %v625_v30 = vld [vmem:[#allocation6 + $0x8] sm:$0xff]   ;;  %v626_v31 = vld [vmem:[#allocation6 + $0x10] sm:$0xff]  }
  0x40   :  { %140 = vmatpush1.bf16.msra.mxu0 %v604_v6  ;;  %539 = vmatprep.subr.bf16.mxu1 %v612_v14  ;;  %v627_v32 = vld [vmem:[#allocation6 + $0x18] sm:$0xff]   ;;  %v628_v33 = vld [vmem:[#allocation6 + $0x20] sm:$0xff]   ;;  %v629_v55 = vld [vmem:[#allocation6 + $0x28] sm:$0xff]  }
  0x41   :  { %141 = vmatprep.subr.bf16.mxu0 %v605_v7  ;;  %v79_v37 = vld [vmem:[%s814_s2] sm:$0x3]  ;;  %v630_v56 = vld [vmem:[#allocation6 + $0x30] sm:$0xff]   ;;  %v631_v57 = vld [vmem:[#allocation6 + $0x38] sm:$0xff]  }
  0x42   :  { %v84_v39 = vrot.slane %v79_v37, %v83_v36  ;;  %v88_v40 = vrot.slane %v79_v37, %v87_v38  ;;  %v500_v59 = vld [vmem:[%s816_s4] ss:$0 sm:$0xff] }
  0x43   :  { %540 = vmatpush3.bf16.msra.mxu1 %v613_v16  ;;  %v517_v6 = vld [vmem:[%s818_s6] ss:$0 sm:$0xff] }
  0x44   :  { %142 = vmatpush1.bf16.msra.mxu0 %v607_v11  ;;  %541 = vmatprep.subr.bf16.mxu1 %v614_v18 }
  0x45   :  { %566 = vmatprep.subr.bf16.mxu0 %v710_v29 }
  0x47   :  { %499 = vmatmul.mubr.msk.bf16.vlgmr.msra.gmra.mrb[0].mxu0 %vm131_vm0, %v70_v17  ;;  %542 = vmatpush3.bf16.msra.mxu1 %v615_v19 }
  0x48   :  { %543 = vmatprep.subr.bf16.mxu1 %v616_v20  ;;  %567 = vmatpush3.bf16.msra.mxu0 %v624_v28 }
  0x49   :  { %568 = vmatprep.subr.bf16.mxu0 %v710_v29  ;;  %582 = vmatprep.mubr.msk.bf16.mxu0 %vm711_vm1, %v710_v29 }
  0x4b   :  { %544 = vmatpush3.bf16.msra.mxu1 %v617_v21 }
  0x4c   :  { %545 = vmatprep.subr.bf16.mxu1 %v618_v22  ;;  %569 = vmatpush3.bf16.msra.mxu0 %v625_v30 }
  0x4d   :  { %570 = vmatprep.subr.bf16.mxu0 %v710_v29 }
  0x4f   :  { %546 = vmatpush3.bf16.msra.mxu1 %v619_v23 }
  0x50   :  { %547 = vmatprep.subr.bf16.mxu1 %v620_v24  ;;  %571 = vmatpush3.bf16.msra.mxu0 %v626_v31 }
  0x51   :  { %572 = vmatprep.subr.bf16.mxu0 %v710_v29 }
  0x53   :  { %548 = vmatpush3.bf16.msra.mxu1 %v621_v25 }
  0x54   :  { %549 = vmatprep.subr.bf16.mxu1 %v622_v26  ;;  %573 = vmatpush3.bf16.msra.mxu0 %v627_v32 }
  0x55   :  { %574 = vmatprep.subr.bf16.mxu0 %v710_v29 }
  0x57   :  { %550 = vmatpush3.bf16.msra.mxu1 %v623_v27 }
  0x58   :  { %575 = vmatpush3.bf16.msra.mxu0 %v628_v33 }
  0x59   :  { %576 = vmatprep.subr.bf16.mxu0 %v710_v29 }
  0x5c   :  { %577 = vmatpush3.bf16.msra.mxu0 %v629_v55 }
  0x5d   :  { %578 = vmatprep.subr.bf16.mxu0 %v710_v29 }
  0x60   :  { %579 = vmatpush3.bf16.msra.mxu0 %v630_v56 }
  0x61   :  { %580 = vmatprep.subr.bf16.mxu0 %v710_v29 }
  0x64   :  { %581 = vmatpush3.bf16.msra.mxu0 %v631_v57 }
 0x11a   :  { %v169_v41 = vpop.f32.mrb[0].mxu0 }
 0x11b   :  { %v170_v42 = vadd.f32 %v169_v41, %v84_v39  ;;  %v171_v43 = vpop.f32.mrb[1].mxu0 }
 0x11c   :  { %v172_v44 = vadd.f32 %v171_v43, %v88_v40  ;;  %v173_v45 = vpop.f32.mrb[2].mxu0 }
 0x11d   :  { %v174_v46 = vadd.f32 %v173_v45, %v84_v39  ;;  %v175_v47 = vpop.f32.mrb[3].mxu0  ;;  %v178_v49 = vmax.f32 %v170_v42, 0.0 }
 0x11e   :  { %v176_v48 = vadd.f32 %v175_v47, %v88_v40  ;;  %v179_v51 = vmax.f32 %v172_v44, 0.0 }
 0x11f   :  { %v180_v50 = vmax.f32 %v174_v46, 0.0 }
 0x120   :  { %v181_v52 = vmax.f32 %v176_v48, 0.0 }
 0x121   :  { %v182_v53 = vpack.c.bf16 %v180_v50, %v178_v49 }
 0x122   :  { %v183_v54 = vpack.c.bf16 %v181_v52, %v179_v51 }
 0x124   :  { %351 = vmatprep.mubr.bf16.mxu1 %v183_v54 }
 0x125   :  { %352 = vmatmul.mubr.bf16.vlgmr.msra.gmra.mrb[0].mxu1 %v182_v53 }
 0x1f8   :  { %v551_v58 = vpop.f32.mrb[0].mxu1 }
 0x1f9   :  { %v552_v60 = vpop.f32.mrb[1].mxu1 }
 0x1fa   :  { %v553_v61 = vadd.f32 %v552_v60, %v551_v58  ;;  %v554_v62 = vpop.f32.mrb[2].mxu1 }
 0x1fb   :  { %v555_v63 = vpop.f32.mrb[3].mxu1 }
 0x1fc   :  { %v354_v0 = vadd.f32 %v553_v61, %v500_v59  ;;  %v556_v1 = vadd.f32 %v555_v63, %v554_v62 }
 0x1fe   :  { %v357_v2 = vadd.f32 %v556_v1, %v500_v59  ;;  %v360_v3 = vmax.f32 %v354_v0, 0.0 }
 0x200   :  { %v361_v4 = vmax.f32 %v357_v2, 0.0 }
 0x202   :  { %v362_v5 = vpack.c.bf16 %v361_v4, %v360_v3 }
 0x204   :  { %583 = vmatmul.mubr.bf16.vlgmr.msra.gmra.mrb[4].mxu0 %v362_v5 }
 0x2d7   :  { %v468_v7 = vpop.f32.mrb[4].mxu0 }
 0x2d8   :  { %v584_v8 = vpop.f32.mrb[5].mxu0  ;;  %v469_v10 = vadd.f32 %v517_v6, %v468_v7 }
 0x2d9   :  { %v471_v9 = vpop.f32.mrb[6].mxu0 }
 0x2da   :  { %v472_v11 = vadd.f32 %v517_v6, %v471_v9  ;;  %v585_v12 = vpop.f32.mrb[7].mxu0 }
 0x2dc   :  { %v533_v13 = vpack.c.bf16 %v472_v11, %v469_v10 }
 0x2de   :  { %534 = vst [vmem:[%s819_s7] sm:$0xff] %v533_v13  }
 0x2df   :  { %489 = vsyncpa [#allocation3], 1 }
 0x2e0   :  { %490 = vsyncpa [#allocation5], 1 }

</bundles_post_ra>
